<compile_context>
chip_gen: v5e
topology: v5e:2x2
jax: 0.10.0
libtpu: 0.0.40
codegen_flags: <defaults>
</compile_context>

<pallas_src>
import math
import functools

import jax
import jax.numpy as jnp
from jax import lax
from jax.experimental import pallas as pl
from jax.experimental.pallas import tpu as pltpu

_LANES = 128
_MAX_PACKED_LANES = 4096  # cap on packed row width L = lcm(dim, 128)


def _round_up(x, m):
    return ((x + m - 1) // m) * m


def _choose_packing(dim):
    """Return (G, L): pack G positions per L-lane output row, L = G * dim."""
    if dim % _LANES == 0:
        return 1, dim
    L = math.lcm(dim, _LANES)
    if L <= _MAX_PACKED_LANES:
        return L // dim, L
    # TODO(synk): rare fallback (huge lcm) produces a non-128-multiple last dim
    # and therefore masked stores; acceptable for exotic dims.
    return 1, dim


def _vmem_budget_bytes():
    """Per-chip VMEM usage target (stays under the default scoped limits)."""
    try:
        kind = jax.devices()[0].device_kind.lower()
    except Exception:  # pragma: no cover
        kind = ""
    if "v7" in kind:
        return 26 * 1024 * 1024   # faster HBM -> bigger blocks; < 32 MiB default
    if "v6" in kind:
        return 24 * 1024 * 1024   # < 32 MiB default scoped VMEM
    return 10 * 1024 * 1024       # v5e / unknown: < 16 MiB default scoped VMEM


def _expand(e_ref, x_ref, L):
    """x_ref: (TR, G) f32, e_ref: (G, L) f32 with E[g,l] = (l // dim == g).

    Returns x_big (TR, L) with x_big[r, l] = x[r, l // dim], computed on the
    (otherwise idle) MXU.  G == 1 degenerates to a plain lane broadcast.
    """
    x = x_ref[...]
    if x.shape[-1] == 1:
        return jnp.broadcast_to(x, (x.shape[0], L))
    return jnp.dot(x, e_ref[...], preferred_element_type=jnp.float32)


def _onehot_kernel(e_ref, x_ref, o_ref, *, dim):
    # out[i, d] = float(x[i] == d)   (== torch.index_select on eye(dim))
    L = o_ref.shape[-1]
    lane = lax.broadcasted_iota(jnp.int32, (1, L), 1)
    d = (lane % dim).astype(jnp.float32)
    x_big = _expand(e_ref, x_ref, L)          # f32; exact for |x| < 2^24
    o_ref[...] = (x_big == d).astype(o_ref.dtype)


def _binary_kernel(e_ref, x_ref, o_ref, *, dim):
    # out[i, d] = float(((x[i] + 1) & (1 << d)) != 0); the +1 is folded into
    # the wrapper-side input cast (so it costs TR*G, not TR*L, work).
    L = o_ref.shape[-1]
    lane = lax.broadcasted_iota(jnp.int32, (1, L), 1)
    d = lane % dim
    bit = jnp.left_shift(jnp.int32(1), d)                     # (1, L)
    xi = _expand(e_ref, x_ref, L).astype(jnp.int32)           # exact < 2^24
    o_ref[...] = ((xi & bit) != 0).astype(o_ref.dtype)


def _sinusoid_kernel(e_ref, x_ref, o_ref, *, dim):
    # pe[i, 2k]   = sin(x[i] * exp(2k * -ln(10000)/dim))
    # pe[i, 2k+1] = cos(...) = sin(... + pi/2)   -> one EUP op per element
    L = o_ref.shape[-1]
    lane = lax.broadcasted_iota(jnp.int32, (1, L), 1)
    d = lane % dim
    base = ((d // 2) * 2).astype(jnp.float32)                     # (1, L)
    div = jnp.exp(base * (-math.log(10000.0) / dim))              # (1, L) only
    phase = (d % 2).astype(jnp.float32) * (math.pi / 2.0)         # (1, L)
    x_big = _expand(e_ref, x_ref, L)
    o_ref[...] = jnp.sin(x_big * div + phase).astype(o_ref.dtype)


def _encode(kernel, x_flat, dim, *, out_dtype=jnp.float32, block_rows=None,
            pre_add=0.0):
    """x_flat: (N,) -> (N, dim) out_dtype via a lane-dense, row-tiled Pallas call."""
    n = x_flat.shape[0]
    G, L = _choose_packing(dim)
    out_bytes = jnp.dtype(out_dtype).itemsize
    row_mult = 8 if out_bytes >= 4 else (16 if out_bytes == 2 else 32)

    n_pack = -(-n // G)                      # packed rows needed

    # Row-tile cap from the VMEM budget: double-buffered output block
    # (tr * L * out_bytes) + double-buffered lane-padded f32 input block
    # (tr * 128 * 4) + resident expansion matrix E.
    e_bytes = _round_up(max(G, 1), 8) * L * 4
    if block_rows is not None:
        cap = max(row_mult, _round_up(block_rows, row_mult))
    else:
        per_row = 2 * (L * out_bytes + _LANES * 4)
        avail = max(_vmem_budget_bytes() - 2 * e_bytes - (2 << 20), 0)
        cap = max(row_mult, (avail // per_row) // row_mult * row_mult)

    tr = min(cap, _round_up(max(n_pack, 1), row_mult))
    if block_rows is None and n_pack > row_mult:
        # Prefer >= 2 grid steps so the "parallel" axis can shard across the
        # two TensorCores on v7x (harmless on single-TC v5e/v6e).
        tr = min(tr, _round_up(-(-n_pack // 2), row_mult))
    n_pack_pad = _round_up(max(n_pack, 1), tr)
    steps = n_pack_pad // tr

    # Input as f32 (the expansion matmul runs in f32); +pre_add folded here.
    x_pad = jnp.pad(x_flat.astype(jnp.float32) + jnp.float32(pre_add),
                    (0, n_pack_pad * G - n))
    x2 = x_pad.reshape(n_pack_pad, G)

    # Compile-time 0/1 expansion matrix: E[g, l] = (l // dim == g).
    lane = jnp.arange(L, dtype=jnp.int32)
    grp = jnp.arange(G, dtype=jnp.int32)
    e_mat = ((lane[None, :] // dim) == grp[:, None]).astype(jnp.float32)

    kfn = functools.partial(kernel, dim=dim)
    is_sin = kernel is _sinusoid_kernel
    cost = pl.CostEstimate(
        flops=2 * n_pack_pad * L * G + 4 * n_pack_pad * L,
        transcendentals=(n_pack_pad * L) if is_sin else 0,
        bytes_accessed=n_pack_pad * G * 4 + G * L * 4
        + n_pack_pad * L * out_bytes,
    )

    out = pl.pallas_call(
        kfn,
        out_shape=jax.ShapeDtypeStruct((n_pack_pad, L), out_dtype),
        grid_spec=pltpu.PrefetchScalarGridSpec(
            num_scalar_prefetch=0,
            grid=(steps,),
            in_specs=[
                pl.BlockSpec((G, L), lambda i: (0, 0)),    # E: resident, tiny
                pl.BlockSpec((tr, G), lambda i: (i, 0)),   # packed positions
            ],
            out_specs=pl.BlockSpec((tr, L), lambda i: (i, 0)),
        ),
        compiler_params=pltpu.CompilerParams(dimension_semantics=("parallel",)),
        cost_estimate=cost,
    )(e_mat, x2)
    # (n_pack_pad, G*dim) -> (n_pack_pad*G, dim): pure row-major reshape, free.
    return out.reshape(n_pack_pad * G, dim)[:n]


class PositionalEncoding:
    """JAX/Pallas port of the PyTorch PositionalEncoding module (forward only)."""

    def __init__(self, dim: int, mode: str = "onehot",
                 out_dtype=jnp.float32, block_rows=None):
        self.dim = dim
        self.mode = mode
        self.out_dtype = out_dtype     # bf16 is lossless for onehot/binary
        self.block_rows = block_rows   # override row tile (mainly for testing)
        if mode == "binary" and dim > 31:
            raise ValueError("binary mode supports dim <= 31 (int32 bit masks)")
        # The PyTorch module stores I = eye(dim).byte(); the one-hot kernel
        # synthesizes the same gather arithmetically, so no parameter tensor
        # needs to be materialized.

    def __call__(self, x):
        if self.mode == "onehot":
            return self.onehot(x.astype(jnp.int32))
        elif self.mode == "binary":
            return self.binary(x.astype(jnp.int32))
        elif self.mode == "sinusoid":
            return self.sinusoid(x)
        raise ValueError(f"unknown mode {self.mode!r}")

    def onehot(self, x):
        # NOTE: out-of-range positions give all-zero rows (jax.nn.one_hot
        # semantics) rather than erroring like torch.index_select.
        out_shape = tuple(x.shape) + (self.dim,)
        out = _encode(_onehot_kernel, x.reshape(-1), self.dim,
                      out_dtype=self.out_dtype, block_rows=self.block_rows)
        return out.reshape(out_shape)

    def binary(self, x):
        out_shape = tuple(x.shape) + (self.dim,)
        out = _encode(_binary_kernel, x.reshape(-1), self.dim,
                      out_dtype=self.out_dtype, block_rows=self.block_rows,
                      pre_add=1.0)
        return out.reshape(out_shape)

    def sinusoid(self, x):
        # PyTorch version assumes x is 1-D: pe has shape (x.shape[0], dim).
        flat = x.reshape(-1).astype(jnp.float32)
        return _encode(_sinusoid_kernel, flat, self.dim,
                       out_dtype=self.out_dtype, block_rows=self.block_rows)

    # TODO(synk): binary_to_int / binary_logits_to_binary / onehot_logits_to_int
    # are auxiliary (non-forward) helpers; not kernelized here.


# ----------------------------- references ----------------------------------
def _ref_onehot(x, dim):
    return jax.nn.one_hot(x.astype(jnp.int32), dim, dtype=jnp.float32)


def _ref_binary(x, dim):
    xi = x.astype(jnp.int32) + 1
    mask = (2 ** jnp.arange(dim)).astype(jnp.int32)
    return ((xi[..., None] & mask) != 0).astype(jnp.float32)


def _ref_sinusoid(x, dim):
    x = x.astype(jnp.float32)
    div = jnp.exp(jnp.arange(0, dim, 2, dtype=jnp.float32) * (-math.log(10000.0) / dim))
    pe = jnp.zeros((x.shape[0], dim), jnp.float32)
    pe = pe.at[:, 0::2].set(jnp.sin(x[:, None] * div))
    pe = pe.at[:, 1::2].set(jnp.cos(x[:, None] * div))
    return pe


if __name__ == "__main__":
    key = jax.random.PRNGKey(0)
    dim = 16
    k1, k2, k3, k4 = jax.random.split(key, 4)

    # Default mode ('onehot'): integer positions of shape (4, 8).
    x_int = jax.random.randint(k1, (4, 8), 0, dim, dtype=jnp.int32)

    pe_onehot = PositionalEncoding(dim, mode="onehot")
    y_onehot = jax.block_until_ready(pe_onehot(x_int))
    assert y_onehot.shape == (4, 8, dim) and y_onehot.dtype == jnp.float32
    assert jnp.allclose(y_onehot, _ref_onehot(x_int, dim))

    # 'binary' mode.
    pe_binary = PositionalEncoding(dim, mode="binary")
    y_binary = jax.block_until_ready(pe_binary(x_int))
    assert y_binary.shape == (4, 8, dim) and y_binary.dtype == jnp.float32
    assert jnp.allclose(y_binary, _ref_binary(x_int, dim))

    # 'sinusoid' mode: 1-D float positions of shape (8,).
    x_pos = jax.random.uniform(k2, (8,), jnp.float32, 0.0, 32.0)
    pe_sin = PositionalEncoding(dim, mode="sinusoid")
    y_sin = jax.block_until_ready(pe_sin(x_pos))
    assert y_sin.shape == (8, dim) and y_sin.dtype == jnp.float32
    assert jnp.allclose(y_sin, _ref_sinusoid(x_pos, dim), atol=1e-5)

    # Multi-step grid + ragged packing with a tiny explicit row tile.
    x_big = jax.random.randint(k3, (3, 800), 0, dim, dtype=jnp.int32)  # 2400 pos
    pe_small = PositionalEncoding(dim, mode="onehot", block_rows=8)
    assert jnp.allclose(jax.block_until_ready(pe_small(x_big)),
                        _ref_onehot(x_big, dim))

    x_pos2 = jax.random.uniform(k2, (2000,), jnp.float32, 0.0, 32.0)
    pe_sin_small = PositionalEncoding(dim, mode="sinusoid", block_rows=8)
    assert jnp.allclose(jax.block_until_ready(pe_sin_small(x_pos2)),
                        _ref_sinusoid(x_pos2, dim), atol=1e-5)

    # Default (budget-sized) tiling, exercises the >=2-step megacore split.
    x_med = jax.random.randint(k4, (4096,), 0, dim, dtype=jnp.int32)
    assert jnp.allclose(jax.block_until_ready(pe_onehot(x_med)),
                        _ref_onehot(x_med, dim))
    assert jnp.allclose(jax.block_until_ready(pe_binary(x_med)),
                        _ref_binary(x_med, dim))

    # Non-divisor dims -> lcm packing keeps stores lane-dense.
    x_nd = jax.random.randint(k1, (5, 7), 0, 24, dtype=jnp.int32)
    pe_nd = PositionalEncoding(24, mode="onehot")
    assert jnp.allclose(jax.block_until_ready(pe_nd(x_nd)), _ref_onehot(x_nd, 24))

    x_pos3 = jax.random.uniform(k2, (37,), jnp.float32, 0.0, 64.0)
    pe_sin10 = PositionalEncoding(10, mode="sinusoid")
    assert jnp.allclose(jax.block_until_ready(pe_sin10(x_pos3)),
                        _ref_sinusoid(x_pos3, 10), atol=1e-5)

    # Lossless bf16 output option for onehot (halves HBM store traffic).
    pe_bf16 = PositionalEncoding(dim, mode="onehot", out_dtype=jnp.bfloat16)
    y_bf16 = jax.block_until_ready(pe_bf16(x_int))
    assert y_bf16.dtype == jnp.bfloat16
    assert jnp.allclose(y_bf16.astype(jnp.float32), _ref_onehot(x_int, dim))

    print("KERNEL_OK")
</pallas_src>

<mosaic_0001>
module attributes {stable_mosaic.version = 11 : i64} {
  func.func @_onehot_kernel(%arg0: i32, %arg1: memref<8x128xf32, #tpu.memory_space<vmem>>, %arg2: memref<8x8xf32, #tpu.memory_space<vmem>>, %arg3: memref<8x128xf32, #tpu.memory_space<vmem>>) attributes {dimension_semantics = [#tpu.dimension_semantics<parallel>], iteration_bounds = array<i64: 1>, scalar_prefetch = 0 : i64, scratch_operands = 0 : i64, tpu.core_type = #tpu.core_type<tc>, window_params = [{pipeline_mode = #tpu.pipeline_mode<synchronous>, transform_indices = @transform_0, window_bounds = array<i64: 8, 128>}, {transform_indices = @transform_1, window_bounds = array<i64: 8, 8>}, {transform_indices = @transform_2, window_bounds = array<i64: 8, 128>}]} {
    %0 = tpu.iota {dimensions = array<i32: 1>} : vector<1x128xi32>
    %c16_i32 = arith.constant 16 : i32
    %c0_i32 = arith.constant 0 : i32
    %1 = arith.cmpi eq, %c16_i32, %c0_i32 : i32
    %c1_i32 = arith.constant 1 : i32
    %2 = arith.select %1, %c1_i32, %c16_i32 : i32
    %3 = vector.broadcast %2 : i32 to vector<1x128xi32>
    %4 = arith.remsi %0, %3 : vector<1x128xi32>
    %c0_i32_0 = arith.constant 0 : i32
    %5 = vector.broadcast %c0_i32_0 : i32 to vector<1x128xi32>
    %6 = arith.cmpi ne, %4, %5 : vector<1x128xi32>
    %c0_i32_1 = arith.constant 0 : i32
    %7 = vector.broadcast %c0_i32_1 : i32 to vector<1x128xi32>
    %8 = arith.cmpi slt, %4, %7 : vector<1x128xi32>
    %c0_i32_2 = arith.constant 0 : i32
    %9 = arith.cmpi slt, %2, %c0_i32_2 : i32
    %10 = vector.broadcast %9 : i1 to vector<1x128xi1>
    %11 = vector.broadcast %10 : vector<1x128xi1> to vector<1x128xi1>
    %12 = arith.xori %8, %11 : vector<1x128xi1>
    %13 = arith.andi %12, %6 : vector<1x128xi1>
    %14 = vector.broadcast %2 : i32 to vector<1x128xi32>
    %15 = arith.addi %4, %14 : vector<1x128xi32>
    %16 = arith.select %13, %15, %4 : vector<1x128xi1>, vector<1x128xi32>
    %17 = arith.sitofp %16 : vector<1x128xi32> to vector<1x128xf32>
    %c0 = arith.constant 0 : index
    %c0_3 = arith.constant 0 : index
    %18 = vector.load %arg2[%c0, %c0_3] : memref<8x8xf32, #tpu.memory_space<vmem>>, vector<8x8xf32>
    %c0_4 = arith.constant 0 : index
    %c0_5 = arith.constant 0 : index
    %19 = vector.load %arg1[%c0_4, %c0_5] : memref<8x128xf32, #tpu.memory_space<vmem>>, vector<8x128xf32>
    %cst = arith.constant dense<0.000000e+00> : vector<8x128xf32>
    %20 = tpu.matmul %18, %19, %cst {dimension_numbers = #tpu.dot_dimension_numbers<[1], [0], [0], [1], [0, 0, 1, 1], [], []>} : vector<8x8xf32>, vector<8x128xf32>, vector<8x128xf32> -> vector<8x128xf32>
    %21 = vector.broadcast %17 : vector<1x128xf32> to vector<8x128xf32>
    %22 = arith.cmpf oeq, %20, %21 : vector<8x128xf32>
    %23 = arith.extui %22 : vector<8x128xi1> to vector<8x128xi32>
    %24 = arith.sitofp %23 : vector<8x128xi32> to vector<8x128xf32>
    %c0_6 = arith.constant 0 : index
    %c0_7 = arith.constant 0 : index
    %25 = vector.load %arg3[%c0_6, %c0_7] : memref<8x128xf32, #tpu.memory_space<vmem>>, vector<8x128xf32>
    tpu.vector_store %arg3[%c0_6, %c0_7], %24 {strides = array<i32>} : memref<8x128xf32, #tpu.memory_space<vmem>>, vector<8x128xf32>,
    return
  }
  func.func @transform_0(%arg0: i32) -> (i32, i32) {
    %c0_i32 = arith.constant 0 : i32
    %c0_i32_0 = arith.constant 0 : i32
    %c0_i32_1 = arith.constant 0 : i32
    return %c0_i32, %c0_i32_0 : i32, i32
  }
  func.func @transform_1(%arg0: i32) -> (i32, i32) {
    %c0_i32 = arith.constant 0 : i32
    %c0_i32_0 = arith.constant 0 : i32
    return %arg0, %c0_i32 : i32, i32
  }
  func.func @transform_2(%arg0: i32) -> (i32, i32) {
    %c0_i32 = arith.constant 0 : i32
    %c0_i32_0 = arith.constant 0 : i32
    return %arg0, %c0_i32 : i32, i32
  }
}

</mosaic_0001>

<bundles_post_ra>
// kernel: tpu_custom_call.1
= control target key start
LH: loop header
LB: loop body
LE: loop exit
PB: predicated region body
PF: predicated region fallthrough
CT: control target
= control target key end

     0   :  { %7 = vsyncpa [#allocation3], 0  ;;  %s215_s0 = inlined_call_operand.hbm [shape: f32[8,128], index: 0, kind: input, shape index: {}]   ;;  %s216_s1 = inlined_call_operand.hbm [shape: f32[8,8], index: 1, kind: input, shape index: {}]   ;;  %s217_s2 = inlined_call_operand.hbm [shape: f32[8,128], index: 2, kind: output, shape index: {}]  }
   0x1   :  { %8 = vsyncpa [#allocation6], 0 }
   0x2   :  { %9 = vsyncpa [#allocation4], 0  ;;  %s15_s11 = sshll.u32 %s215_s0, 4  ;;  %s187_s12 = smov [#allocation2]   ;;  %s16_s11 = int_to_ptr.hbm [resolvable:$true] %s15_s11 }
   0x3   :  { %s17_s13 = sshll.u32 %s187_s12, 4  ;;  %s26_s16 = sshll.u32 %s216_s1, 4  ;;  %s18_s13 = int_to_ptr.vmem [resolvable:$true] %s17_s13  ;;  %s27_s16 = int_to_ptr.hbm [resolvable:$true] %s26_s16 }
   0x4   :  { %20 = dma.hbm_to_vmem [thread:$0]  %s16_s11, 128, %s18_s13, [#allocation3]  }
   0x5   :  { %s188_s17 = smov [#allocation5]  }
   0x6   :  { %s28_s18 = sshll.u32 %s188_s17, 4  ;;  %s29_s18 = int_to_ptr.vmem [resolvable:$true] %s28_s18 }
   0x7   :  { %31 = dma.hbm_to_vmem [thread:$0]  %s27_s16, 128, %s29_s18, [#allocation6]  }
   0x8   :  { %181 = dma.done.wait [#allocation3], 128  }
   0x9   :  { %182 = vsyncadd [#allocation3], 4294967168 }
   0xa   :  { %183 = dma.done.wait [#allocation6], 128  }
   0xb   :  { %184 = vsyncadd [#allocation6], 4294967168  ;;  %vm57_vm0 = vcmask 64512   ;;  %v56_v0 = vld [vmem:[#allocation2] sm:$0xff]  ;;  %v55_v1 = vld [vmem:[#allocation5] sm:$0xff]  ;;  %v40_v2 = vlaneseq  ;;  %s189_s0 = smov [#allocation7]  }
   0xc   :  { %76 = vmatpush.msra.mxu0 %v56_v0  ;;  %s90_s1 = sshll.u32 %s189_s0, 4  ;;  %s92_s21 = sshll.u32 %s217_s2, 4  ;;  %v190_v7 = vmov 0.0   ;;  %s91_s1 = int_to_ptr.vmem [resolvable:$true] %s90_s1  ;;  %s93_s21 = int_to_ptr.hbm [resolvable:$true] %s92_s21 }
   0xd   :  { %103 = vmatmul.msk.f32.vlgmr.msra.gmra.mxu0 %vm57_vm0, %v55_v1  ;;  %v41_v3 = vand.u32 127, %v40_v2 }
   0xf   :  { %v46_v4 = vand.u32 15, %v41_v3 }
  0x11   :  { %v54_v5 = vcvt.s32.f32 %v46_v4 }
  0x8a   :  { %v78_v6 = vpop.f32.mrf.mxu0 }
  0x8b   :  { %vm81_vm1 = vcmp.eq.f32.partialorder %v78_v6, %v54_v5 }
  0x8c   :  { %v104_v8 = vsel %vm81_vm1, 1.0, %v190_v7 }
  0x8d   :  { %84 = vst [vmem:[#allocation7] sm:$0xff] %v104_v8 }
  0x8e   :  { %95 = dma.vmem_to_hbm [thread:$0]  %s91_s1, 128, %s93_s21, [#allocation4]  }
  0x8f   :  { %185 = dma.done.wait [#allocation4], 128  }
  0x90   :  { %186 = vsyncadd [#allocation4], 4294967168 }
  0x91   :  { %100 = vsyncpa [#allocation3], 1 }
  0x92   :  { %101 = vsyncpa [#allocation6], 1 }
  0x93   :  { %102 = vsyncpa [#allocation4], 1 }

</bundles_post_ra>
